<compile_context>
chip_gen: v5e
topology: v5e:2x2
jax: 0.10.0
libtpu: 0.0.40
codegen_flags: <defaults>
</compile_context>

<pallas_src>
import jax
import jax.numpy as jnp
import numpy as np
from jax.experimental import pallas as pl
from jax.experimental.pallas import tpu as pltpu

B, IN_CH, H, W = 2, 4, 16, 16
INTER_CH = max(IN_CH // 2, 1)          # 2
HW = H * W                             # 256 spatial positions per batch
HWS = (H // 2) * (W // 2)              # 64 positions after the 2x2 max-pool
BHW = B * HW                           # 512 lanes (all batches)
KAUG = IN_CH + 1                       # 5 = channels + ones row (bias fold)
PROJ_ROWS = 3 * INTER_CH               # 6 = [theta/N ; phi ; g]
P_ROWS, P_COLS = 8, KAUG + INTER_CH + 1   # packed parameter tile (8, 8)
BN_EPS = 1e-5


# ---------------------------------------------------------------------------
# Fused Pallas kernel (whole block, whole batch, one grid step)
# ---------------------------------------------------------------------------
def _fused_kernel(xa_ref, p_ref, z_ref):
    xa = xa_ref[...]                                        # (5, 512): [x ; 1]
    p = p_ref[...]                                          # (8, 8) packed params

    wproj = p[0:PROJ_ROWS, 0:KAUG]                          # (6, 5) proj weights+bias col
    ww = p[0:IN_CH, KAUG:KAUG + INTER_CH]                   # (4, 2) BN-folded W conv
    bw = p[0:IN_CH, KAUG + INTER_CH:KAUG + INTER_CH + 1]    # (4, 1) BN-folded bias

    # ONE batched projection matmul over all B*HW lanes (biases via ones row).
    proj = jnp.dot(wproj, xa, preferred_element_type=jnp.float32)   # (6, 512)
    theta = proj[0:INTER_CH]                                # (2, 512)  (1/N folded)
    pg = proj[INTER_CH:PROJ_ROWS]                           # (4, 512)  [phi ; g]

    # Per-batch: 2x2 max-pool == max over 4 contiguous HWS-lane quad chunks;
    # m = g·phi^T on VPU/XLU; y_b = m_b·theta_b via (1,1) broadcast FMAs.
    y_parts = []
    for b in range(B):                                      # B=2, statically unrolled
        pgb = pg[:, b * HW:(b + 1) * HW]                    # (4, 256)
        pooled = jnp.maximum(
            jnp.maximum(pgb[:, 0 * HWS:1 * HWS], pgb[:, 1 * HWS:2 * HWS]),
            jnp.maximum(pgb[:, 2 * HWS:3 * HWS], pgb[:, 3 * HWS:4 * HWS]))   # (4, 64)
        phi_p = pooled[0:INTER_CH]                          # (2, 64)
        g_p = pooled[INTER_CH:]                             # (2, 64)
        thb = theta[:, b * HW:(b + 1) * HW]                 # (2, 256)

        rows = []
        for i in range(INTER_CH):
            acc = None
            for j in range(INTER_CH):
                # m_b[i, j] = sum_pos g_p[i, pos] * phi_p[j, pos]  (VPU mul + XLU reduce)
                mij = jnp.sum(g_p[i:i + 1, :] * phi_p[j:j + 1, :],
                              axis=-1, keepdims=True)       # (1, 1)
                term = mij * thb[j:j + 1, :]                # (1, 256)
                acc = term if acc is None else acc + term
            rows.append(acc)
        y_parts.append(jnp.concatenate(rows, axis=0))       # (2, 256)

    y = jnp.concatenate(y_parts, axis=1)                    # (2, 512)

    # ONE output conv (eval-BN folded) over all lanes + bias + residual.
    xres = xa[0:IN_CH]                                      # (4, 512)
    z_ref[...] = jnp.dot(ww, y, preferred_element_type=jnp.float32) + bw + xres


def _full_spec(shape):
    return pl.BlockSpec(shape, lambda i: tuple(0 for _ in shape))


def _fused_call(xa, p):
    return pl.pallas_call(
        _fused_kernel,
        out_shape=jax.ShapeDtypeStruct((IN_CH, BHW), jnp.float32),
        grid=(1,),
        in_specs=[_full_spec((KAUG, BHW)), _full_spec((P_ROWS, P_COLS))],
        out_specs=_full_spec((IN_CH, BHW)),
        compiler_params=pltpu.CompilerParams(dimension_semantics=("arbitrary",)),
    )(xa, p)


# ---------------------------------------------------------------------------
# Wrapper (layout prep + bias / 1/N / eval-BN folding + param packing)
# ---------------------------------------------------------------------------
def non_local_block(x_nchw, params):
    (wt, bt, wp, bp, wg, bg, ww, bw, gamma, beta, rmean, rvar) = params

    # Single quad-major, batch-major, channels-first copy of x:
    # lane = b*HW + (dh*2+dw)*HWS + wh*(W//2) + ww2   (pool == contiguous chunks)
    xq = x_nchw.reshape(B, IN_CH, H // 2, 2, W // 2, 2)
    xq = jnp.transpose(xq, (1, 0, 3, 5, 2, 4)).reshape(IN_CH, BHW)
    xa = jnp.concatenate([xq, jnp.ones((1, BHW), jnp.float32)], axis=0)   # (5, 512)

    # Fold 1/N (N = HWS after sub_sample) into theta; biases become a column.
    inv_n = 1.0 / HWS
    wproj = jnp.concatenate(
        [jnp.concatenate([wt * inv_n, (bt * inv_n)[:, None]], axis=1),
         jnp.concatenate([wp, bp[:, None]], axis=1),
         jnp.concatenate([wg, bg[:, None]], axis=1)], axis=0)            # (6, 5)

    # Fold eval-mode BatchNorm into the output 1x1 conv.
    scale = gamma / jnp.sqrt(rvar + BN_EPS)                              # (C,)
    ww_eff = ww * scale[:, None]                                         # (4, 2)
    bw_eff = (bw - rmean) * scale + beta                                 # (4,)

    # Pack all small params into one (8, 8) tile -> one prologue DMA.
    p = jnp.zeros((P_ROWS, P_COLS), jnp.float32)
    p = p.at[0:PROJ_ROWS, 0:KAUG].set(wproj)
    p = p.at[0:IN_CH, KAUG:KAUG + INTER_CH].set(ww_eff)
    p = p.at[0:IN_CH, KAUG + INTER_CH].set(bw_eff)

    z = _fused_call(xa, p)                                               # (4, 512)

    # Un-permute z (quad-major, batch-major) back to NCHW.
    z = z.reshape(IN_CH, B, 2, 2, H // 2, W // 2)
    z = jnp.transpose(z, (1, 0, 4, 2, 5, 3)).reshape(B, IN_CH, H, W)
    return z


non_local_block_jit = jax.jit(non_local_block)


# ---------------------------------------------------------------------------
# Pure-JAX reference mirroring the PyTorch forward (eval-mode BN)
# ---------------------------------------------------------------------------
def reference(x, params):
    (wt, bt, wp, bp, wg, bg, ww, bw, gamma, beta, rmean, rvar) = params

    def conv1x1(a, w, b):
        return jnp.einsum('oc,bchw->bohw', w, a) + b[None, :, None, None]

    def maxpool2x2(a):
        bb, cc, hh, www = a.shape
        return a.reshape(bb, cc, hh // 2, 2, www // 2, 2).max(axis=(3, 5))

    g_x = maxpool2x2(conv1x1(x, wg, bg)).reshape(B, INTER_CH, -1).transpose(0, 2, 1)
    theta_x = conv1x1(x, wt, bt).reshape(B, INTER_CH, -1).transpose(0, 2, 1)
    phi_x = maxpool2x2(conv1x1(x, wp, bp)).reshape(B, INTER_CH, -1)
    f = jnp.einsum('bnc,bcm->bnm', theta_x, phi_x)
    f_div_c = f / f.shape[-1]
    y = jnp.einsum('bnm,bmc->bnc', f_div_c, g_x)
    y = y.transpose(0, 2, 1).reshape(B, INTER_CH, H, W)
    w_y = conv1x1(y, ww, bw)
    scale = gamma / jnp.sqrt(rvar + BN_EPS)
    w_y = (w_y - rmean[None, :, None, None]) * scale[None, :, None, None] \
        + beta[None, :, None, None]
    return w_y + x


# ---------------------------------------------------------------------------
# Main
# ---------------------------------------------------------------------------
if __name__ == "__main__":
    key = jax.random.PRNGKey(0)
    ks = jax.random.split(key, 13)

    # 1x1 conv weights stored PyTorch-style (C_out, C_in); biases (C_out,).
    wt = 0.1 * jax.random.normal(ks[0], (INTER_CH, IN_CH), jnp.float32)
    bt = 0.1 * jax.random.normal(ks[1], (INTER_CH,), jnp.float32)
    wp = 0.1 * jax.random.normal(ks[2], (INTER_CH, IN_CH), jnp.float32)
    bp = 0.1 * jax.random.normal(ks[3], (INTER_CH,), jnp.float32)
    wg = 0.1 * jax.random.normal(ks[4], (INTER_CH, IN_CH), jnp.float32)
    bg = 0.1 * jax.random.normal(ks[5], (INTER_CH,), jnp.float32)
    ww = 0.1 * jax.random.normal(ks[6], (IN_CH, INTER_CH), jnp.float32)
    bw = 0.1 * jax.random.normal(ks[7], (IN_CH,), jnp.float32)
    # NOTE: PyTorch's __init__ sets the BN gamma/beta of W to 0 (so z == x at
    # init).  Nonzero values are used so the kernel path is actually exercised;
    # the forward-pass semantics are unchanged.
    gamma = 1.0 + 0.1 * jax.random.normal(ks[8], (IN_CH,), jnp.float32)
    beta = 0.1 * jax.random.normal(ks[9], (IN_CH,), jnp.float32)
    rmean = 0.1 * jax.random.normal(ks[10], (IN_CH,), jnp.float32)
    rvar = jnp.abs(jax.random.normal(ks[11], (IN_CH,), jnp.float32)) + 0.5

    params = (wt, bt, wp, bp, wg, bg, ww, bw, gamma, beta, rmean, rvar)
    x = jax.random.normal(ks[12], (B, IN_CH, H, W), jnp.float32)

    z = jax.block_until_ready(non_local_block_jit(x, params))
    z_ref = jax.block_until_ready(reference(x, params))

    assert z.shape == (B, IN_CH, H, W)
    np.testing.assert_allclose(np.asarray(z), np.asarray(z_ref), rtol=1e-4, atol=1e-4)
    print("KERNEL_OK")
</pallas_src>

<mosaic_0001>
module attributes {stable_mosaic.version = 11 : i64} {
  func.func @_fused_kernel(%arg0: i32, %arg1: memref<5x512xf32, #tpu.memory_space<vmem>>, %arg2: memref<8x8xf32, #tpu.memory_space<vmem>>, %arg3: memref<4x512xf32, #tpu.memory_space<vmem>>) attributes {dimension_semantics = [#tpu.dimension_semantics<arbitrary>], iteration_bounds = array<i64: 1>, scalar_prefetch = 0 : i64, scratch_operands = 0 : i64, tpu.core_type = #tpu.core_type<tc>, window_params = [{pipeline_mode = #tpu.pipeline_mode<synchronous>, transform_indices = @transform_0, window_bounds = array<i64: 5, 512>}, {pipeline_mode = #tpu.pipeline_mode<synchronous>, transform_indices = @transform_1, window_bounds = array<i64: 8, 8>}, {pipeline_mode = #tpu.pipeline_mode<synchronous>, transform_indices = @transform_2, window_bounds = array<i64: 4, 512>}]} {
    %c0 = arith.constant 0 : index
    %c0_0 = arith.constant 0 : index
    %0 = vector.load %arg1[%c0, %c0_0] : memref<5x512xf32, #tpu.memory_space<vmem>>, vector<5x512xf32>
    %c0_1 = arith.constant 0 : index
    %c0_2 = arith.constant 0 : index
    %1 = vector.load %arg2[%c0_1, %c0_2] : memref<8x8xf32, #tpu.memory_space<vmem>>, vector<8x8xf32>
    %2 = vector.extract_strided_slice %1 {offsets = [0, 0], sizes = [6, 5], strides = [1, 1]} : vector<8x8xf32> to vector<6x5xf32>
    %3 = vector.extract_strided_slice %1 {offsets = [0, 5], sizes = [4, 2], strides = [1, 1]} : vector<8x8xf32> to vector<4x2xf32>
    %4 = vector.extract_strided_slice %1 {offsets = [0, 7], sizes = [4, 1], strides = [1, 1]} : vector<8x8xf32> to vector<4x1xf32>
    %cst = arith.constant dense<0.000000e+00> : vector<6x512xf32>
    %5 = tpu.matmul %2, %0, %cst {dimension_numbers = #tpu.dot_dimension_numbers<[1], [0], [0], [1], [0, 0, 1, 1], [], []>} : vector<6x5xf32>, vector<5x512xf32>, vector<6x512xf32> -> vector<6x512xf32>
    %6 = vector.extract_strided_slice %5 {offsets = [0, 0], sizes = [2, 512], strides = [1, 1]} : vector<6x512xf32> to vector<2x512xf32>
    %7 = vector.extract_strided_slice %5 {offsets = [2, 0], sizes = [4, 512], strides = [1, 1]} : vector<6x512xf32> to vector<4x512xf32>
    %8 = vector.extract_strided_slice %7 {offsets = [0, 0], sizes = [4, 256], strides = [1, 1]} : vector<4x512xf32> to vector<4x256xf32>
    %9 = vector.extract_strided_slice %8 {offsets = [0, 0], sizes = [4, 64], strides = [1, 1]} : vector<4x256xf32> to vector<4x64xf32>
    %10 = vector.extract_strided_slice %8 {offsets = [0, 64], sizes = [4, 64], strides = [1, 1]} : vector<4x256xf32> to vector<4x64xf32>
    %11 = arith.maximumf %9, %10 : vector<4x64xf32>
    %12 = vector.extract_strided_slice %8 {offsets = [0, 128], sizes = [4, 64], strides = [1, 1]} : vector<4x256xf32> to vector<4x64xf32>
    %13 = vector.extract_strided_slice %8 {offsets = [0, 192], sizes = [4, 64], strides = [1, 1]} : vector<4x256xf32> to vector<4x64xf32>
    %14 = arith.maximumf %12, %13 : vector<4x64xf32>
    %15 = arith.maximumf %11, %14 : vector<4x64xf32>
    %16 = vector.extract_strided_slice %15 {offsets = [0, 0], sizes = [2, 64], strides = [1, 1]} : vector<4x64xf32> to vector<2x64xf32>
    %17 = vector.extract_strided_slice %15 {offsets = [2, 0], sizes = [2, 64], strides = [1, 1]} : vector<4x64xf32> to vector<2x64xf32>
    %18 = vector.extract_strided_slice %6 {offsets = [0, 0], sizes = [2, 256], strides = [1, 1]} : vector<2x512xf32> to vector<2x256xf32>
    %19 = vector.extract_strided_slice %17 {offsets = [0, 0], sizes = [1, 64], strides = [1, 1]} : vector<2x64xf32> to vector<1x64xf32>
    %20 = vector.extract_strided_slice %16 {offsets = [0, 0], sizes = [1, 64], strides = [1, 1]} : vector<2x64xf32> to vector<1x64xf32>
    %21 = arith.mulf %19, %20 : vector<1x64xf32>
    %cst_3 = arith.constant dense<0.000000e+00> : vector<1xf32>
    %22 = vector.multi_reduction <add>, %21, %cst_3 [1] : vector<1x64xf32> to vector<1xf32>
    %23 = vector.shape_cast %22 : vector<1xf32> to vector<1x1xf32>
    %24 = vector.extract_strided_slice %18 {offsets = [0, 0], sizes = [1, 256], strides = [1, 1]} : vector<2x256xf32> to vector<1x256xf32>
    %25 = vector.broadcast %23 : vector<1x1xf32> to vector<1x256xf32>
    %26 = arith.mulf %25, %24 : vector<1x256xf32>
    %27 = vector.extract_strided_slice %17 {offsets = [0, 0], sizes = [1, 64], strides = [1, 1]} : vector<2x64xf32> to vector<1x64xf32>
    %28 = vector.extract_strided_slice %16 {offsets = [1, 0], sizes = [1, 64], strides = [1, 1]} : vector<2x64xf32> to vector<1x64xf32>
    %29 = arith.mulf %27, %28 : vector<1x64xf32>
    %cst_4 = arith.constant dense<0.000000e+00> : vector<1xf32>
    %30 = vector.multi_reduction <add>, %29, %cst_4 [1] : vector<1x64xf32> to vector<1xf32>
    %31 = vector.shape_cast %30 : vector<1xf32> to vector<1x1xf32>
    %32 = vector.extract_strided_slice %18 {offsets = [1, 0], sizes = [1, 256], strides = [1, 1]} : vector<2x256xf32> to vector<1x256xf32>
    %33 = vector.broadcast %31 : vector<1x1xf32> to vector<1x256xf32>
    %34 = arith.mulf %33, %32 : vector<1x256xf32>
    %35 = arith.addf %26, %34 : vector<1x256xf32>
    %36 = vector.extract_strided_slice %17 {offsets = [1, 0], sizes = [1, 64], strides = [1, 1]} : vector<2x64xf32> to vector<1x64xf32>
    %37 = vector.extract_strided_slice %16 {offsets = [0, 0], sizes = [1, 64], strides = [1, 1]} : vector<2x64xf32> to vector<1x64xf32>
    %38 = arith.mulf %36, %37 : vector<1x64xf32>
    %cst_5 = arith.constant dense<0.000000e+00> : vector<1xf32>
    %39 = vector.multi_reduction <add>, %38, %cst_5 [1] : vector<1x64xf32> to vector<1xf32>
    %40 = vector.shape_cast %39 : vector<1xf32> to vector<1x1xf32>
    %41 = vector.extract_strided_slice %18 {offsets = [0, 0], sizes = [1, 256], strides = [1, 1]} : vector<2x256xf32> to vector<1x256xf32>
    %42 = vector.broadcast %40 : vector<1x1xf32> to vector<1x256xf32>
    %43 = arith.mulf %42, %41 : vector<1x256xf32>
    %44 = vector.extract_strided_slice %17 {offsets = [1, 0], sizes = [1, 64], strides = [1, 1]} : vector<2x64xf32> to vector<1x64xf32>
    %45 = vector.extract_strided_slice %16 {offsets = [1, 0], sizes = [1, 64], strides = [1, 1]} : vector<2x64xf32> to vector<1x64xf32>
    %46 = arith.mulf %44, %45 : vector<1x64xf32>
    %cst_6 = arith.constant dense<0.000000e+00> : vector<1xf32>
    %47 = vector.multi_reduction <add>, %46, %cst_6 [1] : vector<1x64xf32> to vector<1xf32>
    %48 = vector.shape_cast %47 : vector<1xf32> to vector<1x1xf32>
    %49 = vector.extract_strided_slice %18 {offsets = [1, 0], sizes = [1, 256], strides = [1, 1]} : vector<2x256xf32> to vector<1x256xf32>
    %50 = vector.broadcast %48 : vector<1x1xf32> to vector<1x256xf32>
    %51 = arith.mulf %50, %49 : vector<1x256xf32>
    %52 = arith.addf %43, %51 : vector<1x256xf32>
    %53 = tpu.concatenate %35, %52 in 0 : vector<1x256xf32>, vector<1x256xf32> -> vector<2x256xf32>
    %54 = vector.extract_strided_slice %7 {offsets = [0, 256], sizes = [4, 256], strides = [1, 1]} : vector<4x512xf32> to vector<4x256xf32>
    %55 = vector.extract_strided_slice %54 {offsets = [0, 0], sizes = [4, 64], strides = [1, 1]} : vector<4x256xf32> to vector<4x64xf32>
    %56 = vector.extract_strided_slice %54 {offsets = [0, 64], sizes = [4, 64], strides = [1, 1]} : vector<4x256xf32> to vector<4x64xf32>
    %57 = arith.maximumf %55, %56 : vector<4x64xf32>
    %58 = vector.extract_strided_slice %54 {offsets = [0, 128], sizes = [4, 64], strides = [1, 1]} : vector<4x256xf32> to vector<4x64xf32>
    %59 = vector.extract_strided_slice %54 {offsets = [0, 192], sizes = [4, 64], strides = [1, 1]} : vector<4x256xf32> to vector<4x64xf32>
    %60 = arith.maximumf %58, %59 : vector<4x64xf32>
    %61 = arith.maximumf %57, %60 : vector<4x64xf32>
    %62 = vector.extract_strided_slice %61 {offsets = [0, 0], sizes = [2, 64], strides = [1, 1]} : vector<4x64xf32> to vector<2x64xf32>
    %63 = vector.extract_strided_slice %61 {offsets = [2, 0], sizes = [2, 64], strides = [1, 1]} : vector<4x64xf32> to vector<2x64xf32>
    %64 = vector.extract_strided_slice %6 {offsets = [0, 256], sizes = [2, 256], strides = [1, 1]} : vector<2x512xf32> to vector<2x256xf32>
    %65 = vector.extract_strided_slice %63 {offsets = [0, 0], sizes = [1, 64], strides = [1, 1]} : vector<2x64xf32> to vector<1x64xf32>
    %66 = vector.extract_strided_slice %62 {offsets = [0, 0], sizes = [1, 64], strides = [1, 1]} : vector<2x64xf32> to vector<1x64xf32>
    %67 = arith.mulf %65, %66 : vector<1x64xf32>
    %cst_7 = arith.constant dense<0.000000e+00> : vector<1xf32>
    %68 = vector.multi_reduction <add>, %67, %cst_7 [1] : vector<1x64xf32> to vector<1xf32>
    %69 = vector.shape_cast %68 : vector<1xf32> to vector<1x1xf32>
    %70 = vector.extract_strided_slice %64 {offsets = [0, 0], sizes = [1, 256], strides = [1, 1]} : vector<2x256xf32> to vector<1x256xf32>
    %71 = vector.broadcast %69 : vector<1x1xf32> to vector<1x256xf32>
    %72 = arith.mulf %71, %70 : vector<1x256xf32>
    %73 = vector.extract_strided_slice %63 {offsets = [0, 0], sizes = [1, 64], strides = [1, 1]} : vector<2x64xf32> to vector<1x64xf32>
    %74 = vector.extract_strided_slice %62 {offsets = [1, 0], sizes = [1, 64], strides = [1, 1]} : vector<2x64xf32> to vector<1x64xf32>
    %75 = arith.mulf %73, %74 : vector<1x64xf32>
    %cst_8 = arith.constant dense<0.000000e+00> : vector<1xf32>
    %76 = vector.multi_reduction <add>, %75, %cst_8 [1] : vector<1x64xf32> to vector<1xf32>
    %77 = vector.shape_cast %76 : vector<1xf32> to vector<1x1xf32>
    %78 = vector.extract_strided_slice %64 {offsets = [1, 0], sizes = [1, 256], strides = [1, 1]} : vector<2x256xf32> to vector<1x256xf32>
    %79 = vector.broadcast %77 : vector<1x1xf32> to vector<1x256xf32>
    %80 = arith.mulf %79, %78 : vector<1x256xf32>
    %81 = arith.addf %72, %80 : vector<1x256xf32>
    %82 = vector.extract_strided_slice %63 {offsets = [1, 0], sizes = [1, 64], strides = [1, 1]} : vector<2x64xf32> to vector<1x64xf32>
    %83 = vector.extract_strided_slice %62 {offsets = [0, 0], sizes = [1, 64], strides = [1, 1]} : vector<2x64xf32> to vector<1x64xf32>
    %84 = arith.mulf %82, %83 : vector<1x64xf32>
    %cst_9 = arith.constant dense<0.000000e+00> : vector<1xf32>
    %85 = vector.multi_reduction <add>, %84, %cst_9 [1] : vector<1x64xf32> to vector<1xf32>
    %86 = vector.shape_cast %85 : vector<1xf32> to vector<1x1xf32>
    %87 = vector.extract_strided_slice %64 {offsets = [0, 0], sizes = [1, 256], strides = [1, 1]} : vector<2x256xf32> to vector<1x256xf32>
    %88 = vector.broadcast %86 : vector<1x1xf32> to vector<1x256xf32>
    %89 = arith.mulf %88, %87 : vector<1x256xf32>
    %90 = vector.extract_strided_slice %63 {offsets = [1, 0], sizes = [1, 64], strides = [1, 1]} : vector<2x64xf32> to vector<1x64xf32>
    %91 = vector.extract_strided_slice %62 {offsets = [1, 0], sizes = [1, 64], strides = [1, 1]} : vector<2x64xf32> to vector<1x64xf32>
    %92 = arith.mulf %90, %91 : vector<1x64xf32>
    %cst_10 = arith.constant dense<0.000000e+00> : vector<1xf32>
    %93 = vector.multi_reduction <add>, %92, %cst_10 [1] : vector<1x64xf32> to vector<1xf32>
    %94 = vector.shape_cast %93 : vector<1xf32> to vector<1x1xf32>
    %95 = vector.extract_strided_slice %64 {offsets = [1, 0], sizes = [1, 256], strides = [1, 1]} : vector<2x256xf32> to vector<1x256xf32>
    %96 = vector.broadcast %94 : vector<1x1xf32> to vector<1x256xf32>
    %97 = arith.mulf %96, %95 : vector<1x256xf32>
    %98 = arith.addf %89, %97 : vector<1x256xf32>
    %99 = tpu.concatenate %81, %98 in 0 : vector<1x256xf32>, vector<1x256xf32> -> vector<2x256xf32>
    %100 = tpu.concatenate %53, %99 in 1 : vector<2x256xf32>, vector<2x256xf32> -> vector<2x512xf32>
    %101 = vector.extract_strided_slice %0 {offsets = [0, 0], sizes = [4, 512], strides = [1, 1]} : vector<5x512xf32> to vector<4x512xf32>
    %cst_11 = arith.constant dense<0.000000e+00> : vector<4x512xf32>
    %102 = tpu.matmul %3, %100, %cst_11 {dimension_numbers = #tpu.dot_dimension_numbers<[1], [0], [0], [1], [0, 0, 1, 1], [], []>} : vector<4x2xf32>, vector<2x512xf32>, vector<4x512xf32> -> vector<4x512xf32>
    %103 = vector.broadcast %4 : vector<4x1xf32> to vector<4x512xf32>
    %104 = arith.addf %102, %103 : vector<4x512xf32>
    %105 = arith.addf %104, %101 : vector<4x512xf32>
    %c0_12 = arith.constant 0 : index
    %c0_13 = arith.constant 0 : index
    %106 = vector.load %arg3[%c0_12, %c0_13] : memref<4x512xf32, #tpu.memory_space<vmem>>, vector<4x512xf32>
    tpu.vector_store %arg3[%c0_12, %c0_13], %105 {strides = array<i32>} : memref<4x512xf32, #tpu.memory_space<vmem>>, vector<4x512xf32>,
    return
  }
  func.func @transform_0(%arg0: i32) -> (i32, i32) {
    %c0_i32 = arith.constant 0 : i32
    %c0_i32_0 = arith.constant 0 : i32
    %c0_i32_1 = arith.constant 0 : i32
    return %c0_i32, %c0_i32_0 : i32, i32
  }
  func.func @transform_1(%arg0: i32) -> (i32, i32) {
    %c0_i32 = arith.constant 0 : i32
    %c0_i32_0 = arith.constant 0 : i32
    %c0_i32_1 = arith.constant 0 : i32
    return %c0_i32, %c0_i32_0 : i32, i32
  }
  func.func @transform_2(%arg0: i32) -> (i32, i32) {
    %c0_i32 = arith.constant 0 : i32
    %c0_i32_0 = arith.constant 0 : i32
    %c0_i32_1 = arith.constant 0 : i32
    return %c0_i32, %c0_i32_0 : i32, i32
  }
}

</mosaic_0001>

<bundles_post_ra>
// kernel: non_local_block.1
= control target key start
LH: loop header
LB: loop body
LE: loop exit
PB: predicated region body
PF: predicated region fallthrough
CT: control target
= control target key end

     0   :  { %vm20_vm0 = vcmask 1044480   ;;  %vm16_vm1 = vcmask 39936   ;;  %vm155_vm2 = vcmask 521221   ;;  %vm128_vm3 = vcmask 520196   ;;  %s508_s0 = inlined_call_operand.vmem [shape: f32[5,512], index: 0, kind: input, shape index: {}]   ;;  %s509_s1 = inlined_call_operand.vmem [shape: f32[8,8], index: 1, kind: input, shape index: {}]   ;;  %s510_s2 = inlined_call_operand.vmem [shape: f32[4,512], index: 2, kind: output, shape index: {}]  }
   0x1   :  { %v422_v0 = vld [vmem:[%s508_s0] sm:$0x1f]  ;;  %v427_v1 = vld [vmem:[%s508_s0 + $0x10] sm:$0x1f]  ;;  %v439_v3 = vld [vmem:[%s508_s0 + $0x8] sm:$0x1f] }
   0x2   :  { %v432_v2 = vld [vmem:[%s509_s1] sm:$0xff]  ;;  %381 = vmatpush.msk.msra.mxu0 %vm20_vm0, %v422_v0  ;;  %385 = vmatpush.msk.msra.mxu2 %vm20_vm0, %v427_v1  ;;  %v444_v4 = vld [vmem:[%s508_s0 + $0x18] sm:$0x1f]  ;;  %s401_s1 = smov 64   ;;  %s402_s0 = smov 123   ;;  %vm184_vm4 = vcmask 1040384  }
   0x3   :  { %382 = vmatmul.msk.f32.vlgmr.msra.gmra.mxu0 %vm16_vm1, %v432_v2  ;;  %386 = vmatmul.msk.f32.vlgmr.msra.gmra.mxu2 %vm16_vm1, %v432_v2  ;;  %vm267_vm5 = vcmask 1041408   ;;  %vm264_vm6 = vcmask 15360   ;;  %vm370_vm7 = vcmask 1043456  }
   0x4   :  { %383 = vmatpush.msk.msra.mxu1 %vm20_vm0, %v439_v3  ;;  %387 = vmatpush.msk.msra.mxu3 %vm20_vm0, %v444_v4 }
   0x5   :  { %384 = vmatmul.msk.f32.vlgmr.msra.gmra.mxu1 %vm16_vm1, %v432_v2  ;;  %388 = vmatmul.msk.f32.vlgmr.msra.gmra.mxu3 %vm16_vm1, %v432_v2 }
  0x80   :  { %v452_v5 = vpop.f32.mrf.mxu0 }
  0x81   :  { %114 = vrot.lane.b32.xlu1 %v452_v5, %s401_s1 }
  0x82   :  { %v457_v7 = vpop.f32.mrf.mxu1 }
  0x86   :  { %v455_v6 = vpop.f32.mrf.mxu2 }
  0x87   :  { %188 = vrot.lane.b32.xlu0 %v455_v6, %s401_s1  ;;  %v231_v43 = vrot.slane %v455_v6, 3  ;;  %v205_v45 = vrot.slane %v455_v6, 4  ;;  %v217_v51 = vrot.slane %v455_v6, 5 }
  0x88   :  { %v461_v8 = vpop.f32.mrf.mxu3 }
  0x89   :  { %119 = vrot.lane.b32.xlu1 %v457_v7, %s401_s1  ;;  %v232_v42 = vrot.slane %v461_v8, 3  ;;  %v206_v44 = vrot.slane %v461_v8, 4  ;;  %v218_v50 = vrot.slane %v461_v8, 5 }
  0x8f   :  { %193 = vrot.lane.b32.xlu0 %v461_v8, %s401_s1 }
  0xf3   :  { %v115_v10 = vpop.permute.xlu1 %114 }
  0xf4   :  { %v117_v25 = vmax.f32 %v452_v5, %v115_v10 }
  0xf9   :  { %v189_v9 = vpop.permute.xlu0 %188 }
  0xfa   :  { %v191_v12 = vmax.f32 %v455_v6, %v189_v9 }
  0xfb   :  { %v120_v15 = vpop.permute.xlu1 %119 }
  0xfc   :  { %v122_v20 = vmax.f32 %v457_v7, %v120_v15  ;;  %v144_v15 = vrot.slane %v452_v5, 5 }
  0xfe   :  { %v123_v26 = vmax.f32 %v117_v25, %v122_v20 }
 0x100   :  { %v125_v29 = vrot.slane %v123_v26, 6  ;;  %v138_v32 = vrot.slane %v123_v26, 7  ;;  %v152_v35 = vrot.slane %v123_v26, 5 }
 0x101   :  { %v194_v11 = vpop.permute.xlu0 %193 }
 0x102   :  { %v196_v13 = vmax.f32 %v461_v8, %v194_v11  ;;  %v127_v30 = vmul.f32 %v125_v29, %v123_v26  ;;  %v140_v33 = vmul.f32 %v138_v32, %v123_v26  ;;  %v154_v36 = vmul.f32 %v152_v35, %v123_v26 }
 0x103   :  { %v403_v11 = vmov 7  }
 0x104   :  { %v197_v14 = vmax.f32 %v191_v12, %v196_v13  ;;  %v129_v31 = vsel %vm128_vm3, %v127_v30, 0.0  ;;  %v141_v34 = vsel %vm128_vm3, %v140_v33, 0.0  ;;  %v156_v37 = vsel %vm155_vm2, %v154_v36, 0.0  ;;  %400 = vset.pattern.permute.xlu0 %v403_v11 }
 0x105   :  { %v165_v38 = vsel %vm155_vm2, %v127_v30, 0.0 }
 0x106   :  { %v225_v16 = vrot.slane %v197_v14, 5  ;;  %v199_v17 = vrot.slane %v197_v14, 6  ;;  %v211_v24 = vrot.slane %v197_v14, 7 }
 0x108   :  { %v227_v18 = vmul.f32 %v225_v16, %v197_v14  ;;  %v201_v19 = vmul.f32 %v199_v17, %v197_v14  ;;  %v213_v27 = vmul.f32 %v211_v24, %v197_v14  ;;  %v145_v14 = vrot.slane %v457_v7, 5 }
 0x109   :  { %v133_v16 = vrot.slane %v457_v7, 4  ;;  %v132_v17 = vrot.slane %v452_v5, 4 }
 0x10a   :  { %v228_v21 = vsel %vm155_vm2, %v227_v18, 0.0  ;;  %v202_v22 = vsel %vm128_vm3, %v201_v19, 0.0  ;;  %v237_v23 = vsel %vm155_vm2, %v201_v19, 0.0  ;;  %v214_v28 = vsel %vm128_vm3, %v213_v27, 0.0 }
 0x10b   :  { %229 = vadd.xlane.f32.xlu0 %v228_v21  ;;  %203 = vadd.xlane.f32.xlu2 %v202_v22  ;;  %v160_v22 = vrot.slane %v457_v7, 3 }
 0x10c   :  { %238 = vadd.xlane.f32.xlu1 %v237_v23  ;;  %v159_v23 = vrot.slane %v452_v5, 3 }
 0x113   :  { %215 = vadd.xlane.f32.xlu2 %v214_v28 }
 0x11b   :  { %130 = vadd.xlane.f32.xlu2 %v129_v31 }
 0x11f   :  { %259 = vperm.xlu0 %400, %v432_v2  }
 0x123   :  { %142 = vadd.xlane.f32.xlu2 %v141_v34 }
 0x12b   :  { %157 = vadd.xlane.f32.xlu2 %v156_v37 }
 0x133   :  { %166 = vadd.xlane.f32.xlu2 %v165_v38 }
 0x14b   :  { %262 = vrot.lane.b32.xlu2 %v432_v2, %s402_s0 }
 0x17e   :  { %v204_v39 = vpop.xlane.xlu2 %203  ;;  %v230_v40 = vpop.xlane.xlu0 %229 }
 0x17f   :  { %v239_v41 = vpop.xlane.xlu1 %238  ;;  %v235_v46 = vmul.f32 %v231_v43, %v230_v40  ;;  %v236_v47 = vmul.f32 %v232_v42, %v230_v40  ;;  %v209_v52 = vmul.f32 %v205_v45, %v204_v39  ;;  %v210_v53 = vmul.f32 %v206_v44, %v204_v39 }
 0x180   :  { %v240_v48 = vmul.f32 %v239_v41, %v205_v45  ;;  %v241_v49 = vmul.f32 %v239_v41, %v206_v44 }
 0x182   :  { %v242_v55 = vadd.f32 %v240_v48, %v235_v46  ;;  %v243_v56 = vadd.f32 %v241_v49, %v236_v47 }
 0x184   :  { %v252_v61 = vrot.slane %v242_v55, 4  ;;  %v253_v62 = vrot.slane %v243_v56, 4 }
 0x186   :  { %v216_v54 = vpop.xlane.xlu2 %215 }
 0x187   :  { %v221_v57 = vmul.f32 %v217_v51, %v216_v54  ;;  %v222_v58 = vmul.f32 %v218_v50, %v216_v54 }
 0x189   :  { %v223_v59 = vadd.f32 %v221_v57, %v209_v52  ;;  %v224_v60 = vadd.f32 %v222_v58, %v210_v53 }
 0x18b   :  { %v246_v63 = vrot.slane %v223_v59, 4  ;;  %v247_v9 = vrot.slane %v224_v60, 4 }
 0x18d   :  { %v256_v10 = vsel %vm184_vm4, %v246_v63, %v252_v61  ;;  %v257_v8 = vsel %vm184_vm4, %v247_v9, %v253_v62 }
 0x18e   :  { %v131_v6 = vpop.xlane.xlu2 %130  ;;  %393 = vmatpush.msk.msrb.mxu2 %vm267_vm5, %v256_v10  ;;  %395 = vmatpush.msk.msrb.mxu3 %vm267_vm5, %v257_v8 }
 0x18f   :  { %v136_v20 = vmul.f32 %v132_v17, %v131_v6  ;;  %v137_v21 = vmul.f32 %v133_v16, %v131_v6 }
 0x191   :  { %v260_v37 = vpop.permute.xlu0 %259 }
 0x196   :  { %v143_v12 = vpop.xlane.xlu2 %142 }
 0x197   :  { %v148_v18 = vmul.f32 %v144_v15, %v143_v12  ;;  %v149_v19 = vmul.f32 %v145_v14, %v143_v12 }
 0x199   :  { %v150_v24 = vadd.f32 %v148_v18, %v136_v20  ;;  %v151_v2 = vadd.f32 %v149_v19, %v137_v21 }
 0x19b   :  { %v174_v32 = vrot.slane %v150_v24, 4  ;;  %v175_v33 = vrot.slane %v151_v2, 4 }
 0x19e   :  { %v158_v13 = vpop.xlane.xlu2 %157 }
 0x19f   :  { %v163_v26 = vmul.f32 %v159_v23, %v158_v13  ;;  %v164_v27 = vmul.f32 %v160_v22, %v158_v13 }
 0x1a6   :  { %v167_v25 = vpop.xlane.xlu2 %166 }
 0x1a7   :  { %v168_v28 = vmul.f32 %v167_v25, %v132_v17  ;;  %v169_v29 = vmul.f32 %v167_v25, %v133_v16 }
 0x1a9   :  { %v170_v30 = vadd.f32 %v168_v28, %v163_v26  ;;  %v171_v31 = vadd.f32 %v169_v29, %v164_v27 }
 0x1ab   :  { %v180_v34 = vrot.slane %v170_v30, 4  ;;  %v181_v35 = vrot.slane %v171_v31, 4 }
 0x1ad   :  { %v186_v36 = vsel %vm184_vm4, %v175_v33, %v181_v35  ;;  %v185_v7 = vsel %vm184_vm4, %v174_v32, %v180_v34 }
 0x1ae   :  { %391 = vmatpush.msk.msrb.mxu1 %vm267_vm5, %v186_v36  ;;  %v263_v5 = vpop.permute.xlu2 %262  ;;  %389 = vmatpush.msk.msrb.mxu0 %vm267_vm5, %v185_v7 }
 0x1af   :  { %392 = vmatmul.msk.f32.vlgmr.msrb.gmra.mxu1 %vm264_vm6, %v263_v5  ;;  %396 = vmatmul.msk.f32.vlgmr.msrb.gmra.mxu3 %vm264_vm6, %v263_v5 }
 0x1b0   :  { %390 = vmatmul.msk.f32.vlgmr.msrb.gmra.mxu0 %vm264_vm6, %v263_v5  ;;  %394 = vmatmul.msk.f32.vlgmr.msrb.gmra.mxu2 %vm264_vm6, %v263_v5 }
 0x22c   :  { %v317_v38 = vpop.f32.mrf.mxu1 }
 0x22d   :  { %v318_v39 = vadd.f32 %v317_v38, %v260_v37  ;;  %v297_v40 = vpop.f32.mrf.mxu0 }
 0x22e   :  { %v298_v41 = vadd.f32 %v297_v40, %v260_v37 }
 0x22f   :  { %v361_v42 = vadd.f32 %v318_v39, %v439_v3 }
 0x230   :  { %v360_v44 = vadd.f32 %v298_v41, %v422_v0 }
 0x231   :  { %v368_v43 = vrot.slane %v361_v42, 4 }
 0x232   :  { %v357_v45 = vpop.f32.mrf.mxu3 }
 0x233   :  { %v371_v46 = vsel %vm370_vm7, %v360_v44, %v368_v43  ;;  %v358_v47 = vadd.f32 %v357_v45, %v260_v37  ;;  %v337_v48 = vpop.f32.mrf.mxu2 }
 0x234   :  { %375 = vst [vmem:[%s510_s2] sm:$0xff] %v371_v46  ;;  %v338_v49 = vadd.f32 %v337_v48, %v260_v37 }
 0x235   :  { %v363_v50 = vadd.f32 %v358_v47, %v444_v4 }
 0x236   :  { %v362_v52 = vadd.f32 %v338_v49, %v427_v1 }
 0x237   :  { %v369_v51 = vrot.slane %v363_v50, 4 }
 0x239   :  { %v372_v53 = vsel %vm370_vm7, %v362_v52, %v369_v51 }
 0x23a   :  { %376 = vst [vmem:[%s510_s2 + $0x8] sm:$0xff] %v372_v53 }

</bundles_post_ra>
